<compile_context>
chip_gen: v7x
topology: tpu7x:2x2x1
jax: 0.10.0
libtpu: 0.0.40
codegen_flags: <defaults>
</compile_context>

<pallas_src>
import functools

import jax
import jax.numpy as jnp
from jax.experimental import pallas as pl
from jax.experimental.pallas import tpu as pltpu


def _round_up(x, m):
    return ((x + m - 1) // m) * m


# ---------------------------------------------------------------------------
# Kernel 1: adaptive avg/max pooling over the spatial axis, rows = B*C.
# ---------------------------------------------------------------------------
def _pool_kernel(x_ref, avg_ref, max_ref, sum_acc, max_acc, *,
                 hw, lane_tile, inv_hw):
    s = pl.program_id(1)
    n_s = pl.num_programs(1)

    @pl.when(s == 0)
    def _():
        sum_acc[...] = jnp.zeros_like(sum_acc)
        max_acc[...] = jnp.full_like(max_acc, -jnp.inf)

    chunk = x_ref[...]                              # (row_tile, lane_tile)

    if hw % lane_tile != 0:
        # Last spatial tile is ragged: padded lanes must contribute 0 to the
        # running sum and -inf to the running max.
        lane = jax.lax.broadcasted_iota(jnp.int32, chunk.shape, 1)
        pos = s * lane_tile + lane
        valid = pos < hw
        chunk_sum = jnp.where(valid, chunk, 0.0)
        chunk_max = jnp.where(valid, chunk, -jnp.inf)
    else:
        chunk_sum = chunk
        chunk_max = chunk

    # Bulk of the reduction stays on the VPU (elementwise accumulate).
    sum_acc[...] = sum_acc[...] + chunk_sum
    max_acc[...] = jnp.maximum(max_acc[...], chunk_max)

    @pl.when(s == n_s - 1)
    def _():
        # Single final lane reduce (XLU) per row tile; divide by true H*W.
        avg_ref[...] = jnp.sum(sum_acc[...], axis=-1, keepdims=True) * inv_hw
        max_ref[...] = jnp.max(max_acc[...], axis=-1, keepdims=True)


def _adaptive_pools(x2, rows, hw):
    """x2: (rows_pad, hw) f32 -> (avg, max), each (rows_pad, 1) f32."""
    rows_pad = x2.shape[0]

    # Tile sizing: lane-dense (>=128, up to 2048) chunks; cap per-tile elems so
    # (x double-buffer + sum/max scratch) ~ 4 MiB, safe on v5e/v6e/v7x.
    lane_tile = min(_round_up(hw, 128), 2048)
    row_cap = max(8, ((1 << 18) // lane_tile) // 8 * 8)   # <= 256K elems / tile
    row_tile = min(rows_pad, row_cap)
    num_r = rows_pad // row_tile
    num_s = pl.cdiv(hw, lane_tile)

    kernel = functools.partial(_pool_kernel, hw=hw, lane_tile=lane_tile,
                               inv_hw=1.0 / float(hw))

    return pl.pallas_call(
        kernel,
        out_shape=(jax.ShapeDtypeStruct((rows_pad, 1), jnp.float32),
                   jax.ShapeDtypeStruct((rows_pad, 1), jnp.float32)),
        grid_spec=pltpu.PrefetchScalarGridSpec(
            num_scalar_prefetch=0,
            grid=(num_r, num_s),
            in_specs=[pl.BlockSpec((row_tile, lane_tile), lambda r, s: (r, s))],
            out_specs=[pl.BlockSpec((row_tile, 1), lambda r, s: (r, 0)),
                       pl.BlockSpec((row_tile, 1), lambda r, s: (r, 0))],
            scratch_shapes=[pltpu.VMEM((row_tile, lane_tile), jnp.float32),
                            pltpu.VMEM((row_tile, lane_tile), jnp.float32)]),
        compiler_params=pltpu.CompilerParams(
            dimension_semantics=("parallel", "arbitrary")),
    )(x2)


# ---------------------------------------------------------------------------
# Kernel 2: tiny MLP head (runs exactly once, fully VMEM resident).
# ---------------------------------------------------------------------------
def _mlp_kernel(avg_ref, max_ref, w1_ref, b1_ref, w2_ref, b2_ref, out_ref, *, c):
    avg_x = avg_ref[...]                         # (B, C)
    max_x = max_ref[...]                         # (B, C)

    # cat([avg, max], dim=1) @ W1  ==  avg @ W1[:C] + max @ W1[C:]
    # Static ref slices -> no wrapper-side weight copies / extra DMAs.
    h = (jnp.dot(avg_x, w1_ref[:c, :], preferred_element_type=jnp.float32)
         + jnp.dot(max_x, w1_ref[c:, :], preferred_element_type=jnp.float32)
         + b1_ref[...])                          # (B, 512)

    h = jnp.maximum(h, 0.0)                      # ReLU; Dropout = identity (eval)

    out = (jnp.dot(h, w2_ref[...], preferred_element_type=jnp.float32)
           + b2_ref[...])                        # (B, num_labels)
    out_ref[...] = out.astype(out_ref.dtype)


def adaptive_pooling_classifier(x, w1, b1, w2, b2):
    """x: (B, C, H, W) float32.  Returns (B, num_labels) float32."""
    B, C, H, W = x.shape
    hidden = w1.shape[1]
    num_labels = w2.shape[1]

    rows = B * C
    hw = H * W

    # Flatten pooling operand to (B*C, H*W); pad rows to a multiple of 8 only
    # if needed (padded rows are ignored downstream).
    x2 = x.reshape(rows, hw)
    rows_pad = _round_up(rows, 8)
    if rows_pad != rows:
        x2 = jnp.pad(x2, ((0, rows_pad - rows), (0, 0)))

    pool_avg, pool_max = _adaptive_pools(x2, rows, hw)

    avg_x = pool_avg[:rows, 0].reshape(B, C)
    max_x = pool_max[:rows, 0].reshape(B, C)

    b1_2d = b1.reshape(1, hidden)
    b2_2d = b2.reshape(1, num_labels)

    vmem = pl.BlockSpec(memory_space=pltpu.MemorySpace.VMEM)
    return pl.pallas_call(
        functools.partial(_mlp_kernel, c=C),
        out_shape=jax.ShapeDtypeStruct((B, num_labels), jnp.float32),
        in_specs=[vmem] * 6,
        out_specs=vmem,
    )(avg_x, max_x, w1, b1_2d, w2, b2_2d)


# ---------------------------------------------------------------------------
# Parameters / reference / test
# ---------------------------------------------------------------------------
def init_params(key, input_dim, num_labels, hidden=512):
    """PyTorch-Linear-shaped params, transposed to (in, out) for the kernel."""
    k1, k2, k3, k4 = jax.random.split(key, 4)
    in1 = input_dim * 2
    lim1 = 1.0 / jnp.sqrt(in1)
    lim2 = 1.0 / jnp.sqrt(hidden)
    w1 = jax.random.uniform(k1, (in1, hidden), jnp.float32, -lim1, lim1)
    b1 = jax.random.uniform(k2, (hidden,), jnp.float32, -lim1, lim1)
    w2 = jax.random.uniform(k3, (hidden, num_labels), jnp.float32, -lim2, lim2)
    b2 = jax.random.uniform(k4, (num_labels,), jnp.float32, -lim2, lim2)
    return w1, b1, w2, b2


def reference_forward(x, w1, b1, w2, b2):
    avg_x = jnp.mean(x, axis=(2, 3))
    max_x = jnp.max(x, axis=(2, 3))
    combined = jnp.concatenate([avg_x, max_x], axis=1)
    h = jnp.maximum(combined @ w1 + b1, 0.0)
    return h @ w2 + b2


if __name__ == "__main__":
    key = jax.random.PRNGKey(0)
    kx, kp = jax.random.split(key)

    B, C, H, W = 2, 4, 16, 16          # input_dim = C = 4
    num_labels = 10

    x = jax.random.normal(kx, (B, C, H, W), jnp.float32)
    w1, b1, w2, b2 = init_params(kp, input_dim=C, num_labels=num_labels)

    out = adaptive_pooling_classifier(x, w1, b1, w2, b2)
    out = jax.block_until_ready(out)

    ref = reference_forward(x, w1, b1, w2, b2)
    assert out.shape == (B, num_labels)
    assert jnp.allclose(out, ref, atol=1e-4, rtol=1e-4), "mismatch vs reference"

    print("KERNEL_OK")
</pallas_src>

<mosaic_0001>
module attributes {stable_mosaic.version = 11 : i64} {
  func.func @_pool_kernel(%arg0: i32, %arg1: i32, %arg2: memref<8x256xf32, #tpu.memory_space<vmem>>, %arg3: memref<8x1xf32, #tpu.memory_space<vmem>>, %arg4: memref<8x1xf32, #tpu.memory_space<vmem>>, %arg5: memref<8x256xf32, #tpu.memory_space<vmem>>, %arg6: memref<8x256xf32, #tpu.memory_space<vmem>>) attributes {dimension_semantics = [#tpu.dimension_semantics<parallel>, #tpu.dimension_semantics<arbitrary>], iteration_bounds = array<i64: 1, 1>, scalar_prefetch = 0 : i64, scratch_operands = 2 : i64, tpu.core_type = #tpu.core_type<tc>, window_params = [{transform_indices = @transform_0, window_bounds = array<i64: 8, 256>}, {transform_indices = @transform_1, window_bounds = array<i64: 8, 1>}, {transform_indices = @transform_2, window_bounds = array<i64: 8, 1>}]} {
    %c0_i32 = arith.constant 0 : i32
    %0 = arith.cmpi eq, %arg1, %c0_i32 : i32
    %1 = arith.extui %0 : i1 to i32
    %c0_i32_0 = arith.constant 0 : i32
    %2 = arith.cmpi ne, %1, %c0_i32_0 : i32
    scf.if %2 {
      %cst = arith.constant 0.000000e+00 : f32
      %13 = vector.broadcast %cst : f32 to vector<8x256xf32>
      %c0_12 = arith.constant 0 : index
      %c0_13 = arith.constant 0 : index
      %14 = vector.load %arg5[%c0_12, %c0_13] : memref<8x256xf32, #tpu.memory_space<vmem>>, vector<8x256xf32>
      tpu.vector_store %arg5[%c0_12, %c0_13], %13 {strides = array<i32>} : memref<8x256xf32, #tpu.memory_space<vmem>>, vector<8x256xf32>,
      %cst_14 = arith.constant 0xFF800000 : f32
      %15 = vector.broadcast %cst_14 : f32 to vector<8x256xf32>
      %c0_15 = arith.constant 0 : index
      %c0_16 = arith.constant 0 : index
      %16 = vector.load %arg6[%c0_15, %c0_16] : memref<8x256xf32, #tpu.memory_space<vmem>>, vector<8x256xf32>
      tpu.vector_store %arg6[%c0_15, %c0_16], %15 {strides = array<i32>} : memref<8x256xf32, #tpu.memory_space<vmem>>, vector<8x256xf32>,
    } else {
    }
    %c0 = arith.constant 0 : index
    %c0_1 = arith.constant 0 : index
    %3 = vector.load %arg2[%c0, %c0_1] : memref<8x256xf32, #tpu.memory_space<vmem>>, vector<8x256xf32>
    %c0_2 = arith.constant 0 : index
    %c0_3 = arith.constant 0 : index
    %4 = vector.load %arg5[%c0_2, %c0_3] : memref<8x256xf32, #tpu.memory_space<vmem>>, vector<8x256xf32>
    %5 = arith.addf %4, %3 : vector<8x256xf32>
    %c0_4 = arith.constant 0 : index
    %c0_5 = arith.constant 0 : index
    %6 = vector.load %arg5[%c0_4, %c0_5] : memref<8x256xf32, #tpu.memory_space<vmem>>, vector<8x256xf32>
    tpu.vector_store %arg5[%c0_4, %c0_5], %5 {strides = array<i32>} : memref<8x256xf32, #tpu.memory_space<vmem>>, vector<8x256xf32>,
    %c0_6 = arith.constant 0 : index
    %c0_7 = arith.constant 0 : index
    %7 = vector.load %arg6[%c0_6, %c0_7] : memref<8x256xf32, #tpu.memory_space<vmem>>, vector<8x256xf32>
    %8 = arith.maximumf %7, %3 : vector<8x256xf32>
    %c0_8 = arith.constant 0 : index
    %c0_9 = arith.constant 0 : index
    %9 = vector.load %arg6[%c0_8, %c0_9] : memref<8x256xf32, #tpu.memory_space<vmem>>, vector<8x256xf32>
    tpu.vector_store %arg6[%c0_8, %c0_9], %8 {strides = array<i32>} : memref<8x256xf32, #tpu.memory_space<vmem>>, vector<8x256xf32>,
    %c0_i32_10 = arith.constant 0 : i32
    %10 = arith.cmpi eq, %arg1, %c0_i32_10 : i32
    %11 = arith.extui %10 : i1 to i32
    %c0_i32_11 = arith.constant 0 : i32
    %12 = arith.cmpi ne, %11, %c0_i32_11 : i32
    scf.if %12 {
      %c0_12 = arith.constant 0 : index
      %c0_13 = arith.constant 0 : index
      %13 = vector.load %arg5[%c0_12, %c0_13] : memref<8x256xf32, #tpu.memory_space<vmem>>, vector<8x256xf32>
      %cst = arith.constant dense<0.000000e+00> : vector<8xf32>
      %14 = vector.multi_reduction <add>, %13, %cst [1] : vector<8x256xf32> to vector<8xf32>
      %15 = vector.shape_cast %14 : vector<8xf32> to vector<8x1xf32>
      %cst_14 = arith.constant 3.906250e-03 : f32
      %16 = vector.broadcast %cst_14 : f32 to vector<8x1xf32>
      %17 = arith.mulf %15, %16 : vector<8x1xf32>
      %c0_15 = arith.constant 0 : index
      %c0_16 = arith.constant 0 : index
      %18 = vector.load %arg3[%c0_15, %c0_16] : memref<8x1xf32, #tpu.memory_space<vmem>>, vector<8x1xf32>
      tpu.vector_store %arg3[%c0_15, %c0_16], %17 {strides = array<i32>} : memref<8x1xf32, #tpu.memory_space<vmem>>, vector<8x1xf32>,
      %c0_17 = arith.constant 0 : index
      %c0_18 = arith.constant 0 : index
      %19 = vector.load %arg6[%c0_17, %c0_18] : memref<8x256xf32, #tpu.memory_space<vmem>>, vector<8x256xf32>
      %cst_19 = arith.constant dense<0xFF800000> : vector<8xf32>
      %20 = vector.multi_reduction <maximumf>, %19, %cst_19 [1] : vector<8x256xf32> to vector<8xf32>
      %21 = vector.shape_cast %20 : vector<8xf32> to vector<8x1xf32>
      %c0_20 = arith.constant 0 : index
      %c0_21 = arith.constant 0 : index
      %22 = vector.load %arg4[%c0_20, %c0_21] : memref<8x1xf32, #tpu.memory_space<vmem>>, vector<8x1xf32>
      tpu.vector_store %arg4[%c0_20, %c0_21], %21 {strides = array<i32>} : memref<8x1xf32, #tpu.memory_space<vmem>>, vector<8x1xf32>,
    } else {
    }
    return
  }
  func.func @transform_0(%arg0: i32, %arg1: i32) -> (i32, i32) {
    %c0_i32 = arith.constant 0 : i32
    return %arg0, %arg1 : i32, i32
  }
  func.func @transform_1(%arg0: i32, %arg1: i32) -> (i32, i32) {
    %c0_i32 = arith.constant 0 : i32
    %c0_i32_0 = arith.constant 0 : i32
    return %arg0, %c0_i32 : i32, i32
  }
  func.func @transform_2(%arg0: i32, %arg1: i32) -> (i32, i32) {
    %c0_i32 = arith.constant 0 : i32
    %c0_i32_0 = arith.constant 0 : i32
    return %arg0, %c0_i32 : i32, i32
  }
}

</mosaic_0001>

<bundles_post_ra>
// kernel: tpu_custom_call.1
= control target key start
LH: loop header
LB: loop body
LE: loop exit
PB: predicated region body
PF: predicated region fallthrough
CT: control target
= control target key end

     0   :  { %8 = vsyncpa [#allocation5], 0  ;;  %s95_s9 = smov [#allocation4]   ;;  %s129_s0 = inlined_call_operand.hbm [shape: f32[8,256], index: 0, kind: input, shape index: {}]   ;;  %s130_s1 = inlined_call_operand.vmem [shape: f32[8,1], index: 1, kind: output, shape index: {0}]   ;;  %s131_s2 = inlined_call_operand.vmem [shape: f32[8,1], index: 2, kind: output, shape index: {1}]  }
   0x1   :  { %s15_s10 = sshll.u32 %s95_s9, 4  ;;  %s71_s13 = scalar_lea.hbm %s129_s0, 256  ;;  %s16_s10 = int_to_ptr.vmem [resolvable:$true] %s15_s10 }
   0x2   :  { %p72_p0 = scmp.ne.s32.totalorder %s129_s0, %s71_s13  ;;  %p75_p1 = scmp.lt.u32.totalorder %s71_s13, %s129_s0 }
   0x4   :  { %p77_p2 = pnand %p75_p1, %p72_p0 }
   0x6   :  { %80 = shalt.err (!%p77_p2)
}
   0x7   :  { %s81_s18 = scalar_lea.vmem %s16_s10, 256  ;;  %p86_p4 = scmp.lt.s32.totalorder %s16_s10, %s16_s10 }
   0x8   :  { %p82_p3 = scmp.ne.s32.totalorder %s16_s10, %s81_s18  ;;  %p87_p5 = scmp.lt.s32.totalorder %s81_s18, %s81_s18 }
   0xa   :  { %p88_p6 = por %p87_p5, %p86_p4 }
   0xc   :  { %p89_p7 = pnand %p88_p6, %p82_p3 }
   0xe   :  { %92 = shalt.err (!%p89_p7)
}
   0xf   :  { %18 = dma.hbm_to_vmem [thread:$0]  %s129_s0, 256, %s16_s10, [#allocation5]  }
  0x10   :  { %93 = dma.done.wait [#allocation5], 256  }
  0x11   :  { %94 = vsyncadd [#allocation5], 4294967040  ;;  %v30_v0 = vld [vmem:[#allocation4] sm:$0xff]  ;;  %v31_v1 = vld [vmem:[#allocation4 + $0x8] sm:$0xff]  ;;  %vm53_vm0 = vcmask 7168  }
  0x12   :  { %v49_v2 = vadd.f32 %v31_v1, %v30_v0  ;;  %v57_v3 = vmax.f32 %v30_v0, %v31_v1 }
  0x14   :  { %50 = vadd.xlane.f32.xlu0 %v49_v2 }
  0x18   :  { %58 = vmax.xlane.f32.xlu0 %v57_v3 }
  0xa1   :  { %v51_v4 = vpop.xlane.xlu0 %50 }
  0xa2   :  { %v52_v5 = vmul.f32 0.00390625, %v51_v4 }
  0xa4   :  { %54 = vst.msk [vmem:[%s130_s1] sm:$0xff] %vm53_vm0, %v52_v5 }
  0xa5   :  { %v59_v6 = vpop.xlane.xlu0 %58 }
  0xa6   :  { %60 = vst.msk [vmem:[%s131_s2] sm:$0xff] %vm53_vm0, %v59_v6 }
  0xa7   :  { %69 = vsyncpa [#allocation5], 1 }

</bundles_post_ra>
